<compile_context>
chip_gen: v6e
topology: v6e:2x2x1
jax: 0.10.0
libtpu: 0.0.40
codegen_flags: <defaults>
</compile_context>

<pallas_src>
import functools
import math

import jax
import jax.numpy as jnp
from jax.experimental import pallas as pl
from jax.experimental.pallas import tpu as pltpu

LN_EPS = 1e-5  # PyTorch nn.LayerNorm default


def _vmem_limit_bytes():
    """Per-chip scoped-VMEM budget: ~3/4 of physical VMEM, capped at 100 MiB.

    v7x (64 MiB physical)  -> 48 MiB (headroom for compiler scratch / buffers)
    v5e/v6e (128 MiB)      -> 96 MiB
    """
    cap = 64 * 1024 * 1024
    try:
        info = pltpu.get_tpu_info()
        cap = getattr(info, "vmem_capacity_bytes", cap) or cap
    except Exception:
        pass
    return int(min(cap * 3 // 4, 100 * 1024 * 1024))


def _layer_norm(x, w, b):
    mu = jnp.mean(x, axis=-1, keepdims=True)
    var = jnp.mean(jnp.square(x - mu), axis=-1, keepdims=True)
    return (x - mu) * jax.lax.rsqrt(var + LN_EPS) * w + b


def _vmem_spec():
    # Whole-array, single-buffered VMEM residency (grid-invariant weights).
    return pl.BlockSpec(memory_space=pltpu.MemorySpace.VMEM)


# ---------------- Pallas kernels ----------------

def _linear_kernel(x_ref, w_ref, b_ref, o_ref):
    # (tm, K)bf16 @ (K, N)bf16 -> f32 acc, + (1, N)f32 bias
    o_ref[...] = (jnp.dot(x_ref[...], w_ref[...],
                          preferred_element_type=jnp.float32)
                  + b_ref[...]).astype(o_ref.dtype)


def _norm_head_kernel(x_ref, nw_ref, nb_ref, hw_ref, hb_ref, o_ref):
    # Final LayerNorm on the cls token + classification head (padded classes).
    x = _layer_norm(x_ref[...].astype(jnp.float32), nw_ref[...], nb_ref[...])
    o_ref[...] = (jnp.dot(x.astype(jnp.bfloat16), hw_ref[...],
                          preferred_element_type=jnp.float32)
                  + hb_ref[...]).astype(o_ref.dtype)


def _encoder_kernel(x_ref, ln1w, ln1b, wqkv, bqkv, wo, bo,
                    ln2w, ln2b, w1, b1, w2, b2, o_ref,
                    resid, ctx_buf, *, num_heads, seq_len):
    """One transformer layer per grid step; grid = (batch_blocks, depth).

    The residual stream (f32) persists in `resid` across the depth axis; the
    token block is only loaded at layer 0 and only stored at the last layer.
    """
    l = pl.program_id(1)
    BB, Sp, D = x_ref.shape
    Dh = D // num_heads
    R = BB * Sp

    @pl.when(l == 0)
    def _():
        resid[...] = x_ref[...].reshape(R, D).astype(jnp.float32)

    x = resid[...]                                           # (R, D) f32

    # Static key-padding mask for the zero-padded token positions.
    if seq_len < Sp:
        kidx = jax.lax.broadcasted_iota(jnp.int32, (Sp, Sp), 1)
        key_bias = jnp.where(kidx < seq_len, 0.0, -1e30).astype(jnp.float32)
    else:
        key_bias = None

    # --- Multi-head self-attention ---
    h = _layer_norm(x, ln1w[...], ln1b[...]).astype(jnp.bfloat16)
    # 1/sqrt(Dh) is pre-folded into the q columns of wqkv / bqkv.
    qkv = (jnp.dot(h, wqkv[...], preferred_element_type=jnp.float32)
           + bqkv[...]).astype(jnp.bfloat16)                 # (R, 3D) bf16

    for b in range(BB):                       # per batch element in the block
        r0 = b * Sp
        for hd in range(num_heads):           # static lane slices, no reshape
            lo = hd * Dh
            q_h = qkv[r0:r0 + Sp, lo:lo + Dh]
            k_h = qkv[r0:r0 + Sp, D + lo:D + lo + Dh]
            v_h = qkv[r0:r0 + Sp, 2 * D + lo:2 * D + lo + Dh]
            s = jax.lax.dot_general(q_h, k_h, (((1,), (1,)), ((), ())),
                                    preferred_element_type=jnp.float32)
            if key_bias is not None:
                s = s + key_bias
            m = jnp.max(s, axis=-1, keepdims=True)
            p = jnp.exp(s - m)
            p = p * pl.reciprocal(jnp.sum(p, axis=-1, keepdims=True),
                                  approx=True)
            ctx = jnp.dot(p.astype(jnp.bfloat16), v_h,
                          preferred_element_type=jnp.float32)  # (Sp, Dh)
            ctx_buf[r0:r0 + Sp, lo:lo + Dh] = ctx.astype(jnp.bfloat16)

    # Single full-K output projection over all heads / batch rows.
    attn = (jnp.dot(ctx_buf[...], wo[...],
                    preferred_element_type=jnp.float32) + bo[...])
    x = x + attn

    # --- MLP ---
    h = _layer_norm(x, ln2w[...], ln2b[...]).astype(jnp.bfloat16)
    h = jnp.dot(h, w1[...], preferred_element_type=jnp.float32) + b1[...]
    # TODO(synk): PyTorch nn.GELU defaults to exact erf-GELU; tanh approximation used here.
    h = jax.nn.gelu(h, approximate=True)
    h = jnp.dot(h.astype(jnp.bfloat16), w2[...],
                preferred_element_type=jnp.float32) + b2[...]
    x = x + h
    resid[...] = x
    # TODO(synk): dropout (pos_drop / attn / mlp dropout) is identity here (eval mode).

    @pl.when(l == pl.num_programs(1) - 1)
    def _():
        o_ref[...] = x.reshape(BB, Sp, D).astype(o_ref.dtype)


# ---------------- Wrapper ----------------

def vit_forward(x, params, *, patch_size, num_heads, num_classes):
    B, C, H, W = x.shape
    p = patch_size
    gh, gw = H // p, W // p
    N = gh * gw
    D = params["pos_embed"].shape[-1]
    depth = params["layers"]["w_qkv"].shape[0]
    S = N + 1
    S_pad = ((S + 15) // 16) * 16              # bf16 sublane-pair alignment
    vmem_limit = _vmem_limit_bytes()

    # ---- Patch embedding ----
    # Patch extraction (glue): NCHW -> (B*N, C*p*p), feature order (c, ph, pw).
    # TODO(synk): fuse the patchify into the embedding kernel (gridded BlockSpec
    # over gh*gw) so this matrix is never materialized in HBM.
    patches = (x.reshape(B, C, gh, p, gw, p)
                 .transpose(0, 2, 4, 1, 3, 5)
                 .reshape(B * N, C * p * p)).astype(jnp.bfloat16)

    M = B * N
    tm = 256                                    # fixed MXU-dense row tile
    M_pad = ((M + tm - 1) // tm) * tm
    if M_pad != M:
        patches = jnp.pad(patches, ((0, M_pad - M), (0, 0)))
    Kdim = C * p * p
    emb = pl.pallas_call(
        _linear_kernel,
        grid=(M_pad // tm,),
        in_specs=[pl.BlockSpec((tm, Kdim), lambda i: (i, 0)),
                  _vmem_spec(), _vmem_spec()],
        out_specs=pl.BlockSpec((tm, D), lambda i: (i, 0)),
        out_shape=jax.ShapeDtypeStruct((M_pad, D), jnp.float32),
        compiler_params=pltpu.CompilerParams(
            dimension_semantics=("parallel",), vmem_limit_bytes=vmem_limit),
    )(patches, params["patch_w"], params["patch_b"])
    tokens = emb[:M].reshape(B, N, D)

    # cls token + position embedding in f32 (activations enter the encoder once).
    cls = jnp.broadcast_to(params["cls_token"], (B, 1, D))
    xt = jnp.concatenate([cls, tokens], axis=1) + params["pos_embed"]
    xt = jnp.pad(xt, ((0, 0), (0, S_pad - S), (0, 0)))        # (B, S_pad, D) f32

    # ---- Transformer encoder: depth folded into the grid ----
    # bb=2 fills the 256-row MXU (v6e/v7x) when there are still >=2 batch
    # blocks to feed both v7x TensorCores; otherwise keep bb=1.
    bb = 2 if (B % 2 == 0 and B >= 4) else 1
    assert B % bb == 0, "batch must be divisible by the batch block"

    kernel = functools.partial(_encoder_kernel, num_heads=num_heads, seq_len=S)
    L = params["layers"]
    w_keys = ("ln1_w", "ln1_b", "w_qkv", "b_qkv", "w_o", "b_o",
              "ln2_w", "ln2_b", "w_fc1", "b_fc1", "w_fc2", "b_fc2")

    def wmap(b, l):                                  # weights indexed by layer
        return (l, 0, 0)

    x_spec = pl.BlockSpec((bb, S_pad, D), lambda b, l: (b, 0, 0))
    w_specs = [pl.BlockSpec((None,) + tuple(L[k].shape[1:]), wmap)
               for k in w_keys]

    xt = pl.pallas_call(
        kernel,
        grid=(B // bb, depth),
        in_specs=[x_spec] + w_specs,
        out_specs=x_spec,
        out_shape=jax.ShapeDtypeStruct((B, S_pad, D), jnp.float32),
        scratch_shapes=[pltpu.VMEM((bb * S_pad, D), jnp.float32),   # residual
                        pltpu.VMEM((bb * S_pad, D), jnp.bfloat16)], # ctx concat
        compiler_params=pltpu.CompilerParams(
            dimension_semantics=("parallel", "arbitrary"),
            vmem_limit_bytes=vmem_limit),
    )(xt, *[L[k] for k in w_keys])

    # ---- Final LayerNorm + classification head on the cls token ----
    cls_out = xt[:, 0]                                            # (B, D) f32
    C_pad = params["head_w"].shape[1]
    logits_pad = pl.pallas_call(
        _norm_head_kernel,
        out_shape=jax.ShapeDtypeStruct((B, C_pad), jnp.float32),
        compiler_params=pltpu.CompilerParams(vmem_limit_bytes=vmem_limit),
    )(cls_out, params["norm_w"], params["norm_b"],
      params["head_w"], params["head_b"])
    return logits_pad[:, :num_classes]


# ---------------- Deterministic parameter init ----------------

def init_params(key, *, img_size, patch_size, in_channels, num_classes,
                embed_dim, depth, num_heads, mlp_ratio):
    p = patch_size
    N = (img_size // p) ** 2
    D = embed_dim
    hidden = int(D * mlp_ratio)
    patch_dim = in_channels * p * p
    C_pad = ((num_classes + 127) // 128) * 128   # lane-dense classifier store
    q_scale = 1.0 / math.sqrt(D // num_heads)    # folded into w_qkv/b_qkv

    def trunc(k, shape, std=0.02):
        return (std * jax.random.truncated_normal(k, -2.0, 2.0, shape)).astype(jnp.float32)

    keys = jax.random.split(key, 4 + depth)
    xav = math.sqrt(6.0 / (D + num_classes))
    head_w = jax.random.uniform(keys[3], (D, num_classes), jnp.float32, -xav, xav)
    head_w = jnp.pad(head_w, ((0, 0), (0, C_pad - num_classes)))

    params = {
        "patch_w": trunc(keys[0], (patch_dim, D)).astype(jnp.bfloat16),
        "patch_b": jnp.zeros((1, D), jnp.float32),
        "cls_token": trunc(keys[1], (1, 1, D)),
        "pos_embed": trunc(keys[2], (1, N + 1, D)),
        "norm_w": jnp.ones((1, D), jnp.float32),
        "norm_b": jnp.zeros((1, D), jnp.float32),
        "head_w": head_w.astype(jnp.bfloat16),
        "head_b": jnp.zeros((1, C_pad), jnp.float32),
    }

    # Per-layer weights stacked along a leading depth axis (grid-indexed).
    w_qkv, w_o, w_fc1, w_fc2 = [], [], [], []
    for i in range(depth):
        k = jax.random.split(keys[4 + i], 4)
        wq = trunc(k[0], (D, 3 * D))
        # Fold the attention scale into the q columns (bias is zero-init, but
        # when importing PyTorch weights fold b_qkv[:D] *= q_scale too).
        wq = wq.at[:, :D].multiply(q_scale)
        w_qkv.append(wq.astype(jnp.bfloat16))
        w_o.append(trunc(k[1], (D, D)).astype(jnp.bfloat16))
        w_fc1.append(trunc(k[2], (D, hidden)).astype(jnp.bfloat16))
        w_fc2.append(trunc(k[3], (hidden, D)).astype(jnp.bfloat16))

    params["layers"] = {
        "ln1_w": jnp.ones((depth, 1, D), jnp.float32),
        "ln1_b": jnp.zeros((depth, 1, D), jnp.float32),
        "w_qkv": jnp.stack(w_qkv),                       # (depth, D, 3D) bf16
        "b_qkv": jnp.zeros((depth, 1, 3 * D), jnp.float32),
        "w_o": jnp.stack(w_o),                           # (depth, D, D) bf16
        "b_o": jnp.zeros((depth, 1, D), jnp.float32),
        "ln2_w": jnp.ones((depth, 1, D), jnp.float32),
        "ln2_b": jnp.zeros((depth, 1, D), jnp.float32),
        "w_fc1": jnp.stack(w_fc1),                       # (depth, D, hid) bf16
        "b_fc1": jnp.zeros((depth, 1, hidden), jnp.float32),
        "w_fc2": jnp.stack(w_fc2),                       # (depth, hid, D) bf16
        "b_fc2": jnp.zeros((depth, 1, D), jnp.float32),
    }
    return params


if __name__ == "__main__":
    # Small but structure-consistent configuration.
    img_size, patch_size, in_channels = 16, 4, 3
    embed_dim, depth, num_heads, mlp_ratio = 32, 2, 4, 4.0
    num_classes, batch = 10, 2

    key = jax.random.PRNGKey(0)
    pkey, xkey = jax.random.split(key)
    params = init_params(pkey, img_size=img_size, patch_size=patch_size,
                         in_channels=in_channels, num_classes=num_classes,
                         embed_dim=embed_dim, depth=depth, num_heads=num_heads,
                         mlp_ratio=mlp_ratio)

    x = jax.random.normal(xkey, (batch, in_channels, img_size, img_size), jnp.float32)

    logits = vit_forward(x, params, patch_size=patch_size,
                         num_heads=num_heads, num_classes=num_classes)
    logits = jax.block_until_ready(logits)

    assert logits.shape == (batch, num_classes), logits.shape
    assert bool(jnp.all(jnp.isfinite(logits)))
    print("KERNEL_OK")
</pallas_src>

<mosaic_0001>
module attributes {stable_mosaic.version = 11 : i64} {
  func.func @_linear_kernel(%arg0: i32, %arg1: memref<256x48xbf16, #tpu.memory_space<vmem>>, %arg2: memref<48x32xbf16, #tpu.memory_space<vmem>>, %arg3: memref<1x32xf32, #tpu.memory_space<vmem>>, %arg4: memref<256x32xf32, #tpu.memory_space<vmem>>) attributes {dimension_semantics = [#tpu.dimension_semantics<parallel>], iteration_bounds = array<i64: 1>, scalar_prefetch = 0 : i64, scratch_operands = 0 : i64, tpu.core_type = #tpu.core_type<tc>, window_params = [{transform_indices = @transform_0, window_bounds = array<i64: 256, 48>}, {pipeline_mode = #tpu.pipeline_mode<synchronous>, transform_indices = @transform_1, window_bounds = array<i64: 48, 32>}, {pipeline_mode = #tpu.pipeline_mode<synchronous>, transform_indices = @transform_2, window_bounds = array<i64: 1, 32>}, {transform_indices = @transform_3, window_bounds = array<i64: 256, 32>}]} {
    %c0 = arith.constant 0 : index
    %c0_0 = arith.constant 0 : index
    %0 = vector.load %arg1[%c0, %c0_0] : memref<256x48xbf16, #tpu.memory_space<vmem>>, vector<256x48xbf16>
    %c0_1 = arith.constant 0 : index
    %c0_2 = arith.constant 0 : index
    %1 = vector.load %arg2[%c0_1, %c0_2] : memref<48x32xbf16, #tpu.memory_space<vmem>>, vector<48x32xbf16>
    %cst = arith.constant dense<0.000000e+00> : vector<256x32xf32>
    %2 = tpu.matmul %0, %1, %cst {dimension_numbers = #tpu.dot_dimension_numbers<[1], [0], [0], [1], [0, 0, 1, 1], [], []>} : vector<256x48xbf16>, vector<48x32xbf16>, vector<256x32xf32> -> vector<256x32xf32>
    %c0_3 = arith.constant 0 : index
    %c0_4 = arith.constant 0 : index
    %3 = vector.load %arg3[%c0_3, %c0_4] : memref<1x32xf32, #tpu.memory_space<vmem>>, vector<1x32xf32>
    %4 = vector.broadcast %3 : vector<1x32xf32> to vector<256x32xf32>
    %5 = arith.addf %2, %4 : vector<256x32xf32>
    %c0_5 = arith.constant 0 : index
    %c0_6 = arith.constant 0 : index
    %6 = vector.load %arg4[%c0_5, %c0_6] : memref<256x32xf32, #tpu.memory_space<vmem>>, vector<256x32xf32>
    tpu.vector_store %arg4[%c0_5, %c0_6], %5 {strides = array<i32>} : memref<256x32xf32, #tpu.memory_space<vmem>>, vector<256x32xf32>,
    return
  }
  func.func @transform_0(%arg0: i32) -> (i32, i32) {
    %c0_i32 = arith.constant 0 : i32
    %c0_i32_0 = arith.constant 0 : i32
    return %arg0, %c0_i32 : i32, i32
  }
  func.func @transform_1(%arg0: i32) -> (i32, i32) {
    %c0_i32 = arith.constant 0 : i32
    %c0_i32_0 = arith.constant 0 : i32
    %c0_i32_1 = arith.constant 0 : i32
    return %c0_i32, %c0_i32_0 : i32, i32
  }
  func.func @transform_2(%arg0: i32) -> (i32, i32) {
    %c0_i32 = arith.constant 0 : i32
    %c0_i32_0 = arith.constant 0 : i32
    %c0_i32_1 = arith.constant 0 : i32
    return %c0_i32, %c0_i32_0 : i32, i32
  }
  func.func @transform_3(%arg0: i32) -> (i32, i32) {
    %c0_i32 = arith.constant 0 : i32
    %c0_i32_0 = arith.constant 0 : i32
    return %arg0, %c0_i32 : i32, i32
  }
}

</mosaic_0001>

<bundles_post_ra>
// kernel: tpu_custom_call.1
= control target key start
LH: loop header
LB: loop body
LE: loop exit
PB: predicated region body
PF: predicated region fallthrough
CT: control target
= control target key end

     0   :  { %vm158_vm0 = vcmask 392192   ;;  %vm368_vm1 = vcmask 261120   ;;  %s781_s1 = inlined_call_operand.vmem [shape: bf16[48,32], index: 1, kind: input, shape index: {}]   ;;  %s782_s0 = inlined_call_operand.vmem [shape: bf16[256,48], index: 0, kind: input, shape index: {}]   ;;  %s783_s2 = inlined_call_operand.vmem [shape: f32[1,32], index: 2, kind: input, shape index: {}]   ;;  %s784_s3 = inlined_call_operand.vmem [shape: f32[256,32], index: 3, kind: output, shape index: {}]  }
   0x1   :  { %v504_v0 = vld [vmem:[%s781_s1 + $0x10] sm:$0xff]   ;;  %v505_v1 = vld [vmem:[%s781_s1 + $0x8] sm:$0xff]   ;;  %v506_v2 = vld [vmem:[%s781_s1] sm:$0xff]  }
   0x2   :  { %460 = vmatprep.subr.bf16.mxu0 %v504_v0  ;;  %498 = vmatprep.subr.bf16.mxu1 %v504_v0  ;;  %v507_v3 = vld [vmem:[%s782_s0] sm:$0xff]   ;;  %v509_v5 = vld [vmem:[%s782_s0 + $0x8] sm:$0xff]   ;;  %v511_v7 = vld [vmem:[%s782_s0 + $0x10] sm:$0xff]  }
   0x3   :  { %461 = vmatpush3.bf16.msra.mxu0 %v504_v0  ;;  %501 = vmatpush3.bf16.msra.mxu1 %v504_v0  ;;  %v508_v4 = vld [vmem:[%s782_s0 + $0x40] sm:$0xff]   ;;  %v510_v6 = vld [vmem:[%s782_s0 + $0x48] sm:$0xff]   ;;  %v512_v8 = vld [vmem:[%s782_s0 + $0x50] sm:$0xff]  }
   0x4   :  { %462 = vmatprep.subr.bf16.mxu0 %v505_v1  ;;  %499 = vmatprep.subr.bf16.mxu1 %v505_v1  ;;  %v513_v9 = vld [vmem:[%s782_s0 + $0x18] sm:$0xff]   ;;  %v515_v11 = vld [vmem:[%s782_s0 + $0x20] sm:$0xff]   ;;  %v517_v13 = vld [vmem:[%s782_s0 + $0x28] sm:$0xff]  }
   0x5   :  { %466 = vmatprep.mubr.msk.bf16.mxu0 %vm158_vm0, %v507_v3  ;;  %482 = vmatprep.mubr.msk.bf16.mxu1 %vm158_vm0, %v508_v4  ;;  %v514_v10 = vld [vmem:[%s782_s0 + $0x58] sm:$0xff]   ;;  %v516_v12 = vld [vmem:[%s782_s0 + $0x60] sm:$0xff]   ;;  %v518_v14 = vld [vmem:[%s782_s0 + $0x68] sm:$0xff]  }
   0x6   :  { %v519_v15 = vld [vmem:[%s782_s0 + $0x30] sm:$0xff]   ;;  %v521_v17 = vld [vmem:[%s782_s0 + $0x38] sm:$0xff]   ;;  %v619_v19 = vld [vmem:[%s783_s2] ss:$0 sm:$0xff] }
   0x7   :  { %463 = vmatpush3.bf16.msra.mxu0 %v505_v1  ;;  %502 = vmatpush3.bf16.msra.mxu1 %v505_v1  ;;  %v520_v16 = vld [vmem:[%s782_s0 + $0x70] sm:$0xff]   ;;  %v522_v18 = vld [vmem:[%s782_s0 + $0x78] sm:$0xff]  }
   0x8   :  { %464 = vmatprep.subr.bf16.mxu0 %v506_v2  ;;  %500 = vmatprep.subr.bf16.mxu1 %v506_v2 }
   0xb   :  { %465 = vmatpush3.bf16.msra.mxu0 %v506_v2  ;;  %503 = vmatpush3.bf16.msra.mxu1 %v506_v2 }
   0xe   :  { %467 = vmatmul.mubr.msk.bf16.vlgmr.msra.gmra.mxu0 %vm158_vm0, %v509_v5  ;;  %483 = vmatmul.mubr.msk.bf16.vlgmr.msra.gmra.mxu1 %vm158_vm0, %v510_v6 }
   0xf   :  { %470 = vmatprep.mubr.msk.bf16.mxu0 %vm158_vm0, %v511_v7  ;;  %486 = vmatprep.mubr.msk.bf16.mxu1 %vm158_vm0, %v512_v8 }
  0x16   :  { %471 = vmatmul.mubr.msk.bf16.gmra.mxu0 %vm158_vm0, %v513_v9  ;;  %487 = vmatmul.mubr.msk.bf16.gmra.mxu1 %vm158_vm0, %v514_v10 }
  0x17   :  { %474 = vmatprep.mubr.msk.bf16.mxu0 %vm158_vm0, %v515_v11  ;;  %490 = vmatprep.mubr.msk.bf16.mxu1 %vm158_vm0, %v516_v12 }
  0x1e   :  { %475 = vmatmul.mubr.msk.bf16.gmra.mxu0 %vm158_vm0, %v517_v13  ;;  %491 = vmatmul.mubr.msk.bf16.gmra.mxu1 %vm158_vm0, %v518_v14 }
  0x1f   :  { %478 = vmatprep.mubr.msk.bf16.mxu0 %vm158_vm0, %v519_v15  ;;  %494 = vmatprep.mubr.msk.bf16.mxu1 %vm158_vm0, %v520_v16 }
  0x26   :  { %479 = vmatmul.mubr.msk.bf16.gmra.mxu0 %vm158_vm0, %v521_v17  ;;  %495 = vmatmul.mubr.msk.bf16.gmra.mxu1 %vm158_vm0, %v522_v18 }
  0xce   :  { %v468_v20 = vpop.f32.mrf.mxu0  ;;  %v484_v21 = vpop.f32.mrf.mxu1 }
  0xcf   :  { %v250_v22 = vadd.f32 %v468_v20, %v619_v19  ;;  %v314_v23 = vadd.f32 %v484_v21, %v619_v19 }
  0xd0   :  { %v241_v24 = vpop.f32.mrf.mxu0  ;;  %v305_v25 = vpop.f32.mrf.mxu1 }
  0xd1   :  { %371 = vst.msk [vmem:[%s784_s3 + $0x10] sm:$0xff] %vm368_vm1, %v250_v22  ;;  %387 = vst.msk [vmem:[%s784_s3 + $0x90] sm:$0xff] %vm368_vm1, %v314_v23  ;;  %v242_v26 = vadd.f32 %v619_v19, %v241_v24  ;;  %v306_v27 = vadd.f32 %v619_v19, %v305_v25 }
  0xd2   :  { %v469_v28 = vpop.f32.mrf.mxu0  ;;  %v485_v29 = vpop.f32.mrf.mxu1 }
  0xd3   :  { %369 = vst.msk [vmem:[%s784_s3] sm:$0xff] %vm368_vm1, %v242_v26  ;;  %385 = vst.msk [vmem:[%s784_s3 + $0x80] sm:$0xff] %vm368_vm1, %v306_v27  ;;  %v253_v30 = vadd.f32 %v469_v28, %v619_v19  ;;  %v317_v31 = vadd.f32 %v485_v29, %v619_v19 }
  0xd4   :  { %v244_v32 = vpop.f32.mrf.mxu0  ;;  %v308_v33 = vpop.f32.mrf.mxu1 }
  0xd5   :  { %372 = vst.msk [vmem:[%s784_s3 + $0x18] sm:$0xff] %vm368_vm1, %v253_v30  ;;  %388 = vst.msk [vmem:[%s784_s3 + $0x98] sm:$0xff] %vm368_vm1, %v317_v31  ;;  %v245_v34 = vadd.f32 %v619_v19, %v244_v32  ;;  %v309_v35 = vadd.f32 %v619_v19, %v308_v33 }
  0xd6   :  { %v472_v36 = vpop.f32.mrf.mxu0  ;;  %v488_v37 = vpop.f32.mrf.mxu1 }
  0xd7   :  { %370 = vst.msk [vmem:[%s784_s3 + $0x8] sm:$0xff] %vm368_vm1, %v245_v34  ;;  %386 = vst.msk [vmem:[%s784_s3 + $0x88] sm:$0xff] %vm368_vm1, %v309_v35  ;;  %v266_v38 = vadd.f32 %v472_v36, %v619_v19  ;;  %v330_v39 = vadd.f32 %v488_v37, %v619_v19 }
  0xd8   :  { %v257_v40 = vpop.f32.mrf.mxu0  ;;  %v321_v41 = vpop.f32.mrf.mxu1 }
  0xd9   :  { %375 = vst.msk [vmem:[%s784_s3 + $0x30] sm:$0xff] %vm368_vm1, %v266_v38  ;;  %391 = vst.msk [vmem:[%s784_s3 + $0xb0] sm:$0xff] %vm368_vm1, %v330_v39  ;;  %v258_v42 = vadd.f32 %v619_v19, %v257_v40  ;;  %v322_v43 = vadd.f32 %v619_v19, %v321_v41 }
  0xda   :  { %v473_v44 = vpop.f32.mrf.mxu0  ;;  %v489_v45 = vpop.f32.mrf.mxu1 }
  0xdb   :  { %373 = vst.msk [vmem:[%s784_s3 + $0x20] sm:$0xff] %vm368_vm1, %v258_v42  ;;  %389 = vst.msk [vmem:[%s784_s3 + $0xa0] sm:$0xff] %vm368_vm1, %v322_v43  ;;  %v269_v46 = vadd.f32 %v473_v44, %v619_v19  ;;  %v333_v47 = vadd.f32 %v489_v45, %v619_v19 }
  0xdc   :  { %v260_v48 = vpop.f32.mrf.mxu0  ;;  %v324_v49 = vpop.f32.mrf.mxu1 }
  0xdd   :  { %376 = vst.msk [vmem:[%s784_s3 + $0x38] sm:$0xff] %vm368_vm1, %v269_v46  ;;  %392 = vst.msk [vmem:[%s784_s3 + $0xb8] sm:$0xff] %vm368_vm1, %v333_v47  ;;  %v261_v50 = vadd.f32 %v619_v19, %v260_v48  ;;  %v325_v51 = vadd.f32 %v619_v19, %v324_v49 }
  0xde   :  { %v476_v52 = vpop.f32.mrf.mxu0  ;;  %v492_v53 = vpop.f32.mrf.mxu1 }
  0xdf   :  { %374 = vst.msk [vmem:[%s784_s3 + $0x28] sm:$0xff] %vm368_vm1, %v261_v50  ;;  %390 = vst.msk [vmem:[%s784_s3 + $0xa8] sm:$0xff] %vm368_vm1, %v325_v51  ;;  %v282_v54 = vadd.f32 %v476_v52, %v619_v19  ;;  %v346_v55 = vadd.f32 %v492_v53, %v619_v19 }
  0xe0   :  { %v273_v56 = vpop.f32.mrf.mxu0  ;;  %v337_v57 = vpop.f32.mrf.mxu1 }
  0xe1   :  { %379 = vst.msk [vmem:[%s784_s3 + $0x50] sm:$0xff] %vm368_vm1, %v282_v54  ;;  %395 = vst.msk [vmem:[%s784_s3 + $0xd0] sm:$0xff] %vm368_vm1, %v346_v55  ;;  %v274_v58 = vadd.f32 %v619_v19, %v273_v56  ;;  %v338_v59 = vadd.f32 %v619_v19, %v337_v57 }
  0xe2   :  { %v477_v60 = vpop.f32.mrf.mxu0  ;;  %v493_v61 = vpop.f32.mrf.mxu1 }
  0xe3   :  { %377 = vst.msk [vmem:[%s784_s3 + $0x40] sm:$0xff] %vm368_vm1, %v274_v58  ;;  %393 = vst.msk [vmem:[%s784_s3 + $0xc0] sm:$0xff] %vm368_vm1, %v338_v59  ;;  %v285_v62 = vadd.f32 %v477_v60, %v619_v19  ;;  %v349_v63 = vadd.f32 %v493_v61, %v619_v19 }
  0xe4   :  { %v276_v0 = vpop.f32.mrf.mxu0  ;;  %v340_v1 = vpop.f32.mrf.mxu1 }
  0xe5   :  { %380 = vst.msk [vmem:[%s784_s3 + $0x58] sm:$0xff] %vm368_vm1, %v285_v62  ;;  %396 = vst.msk [vmem:[%s784_s3 + $0xd8] sm:$0xff] %vm368_vm1, %v349_v63  ;;  %v277_v2 = vadd.f32 %v619_v19, %v276_v0  ;;  %v341_v3 = vadd.f32 %v619_v19, %v340_v1 }
  0xe6   :  { %v480_v4 = vpop.f32.mrf.mxu0  ;;  %v496_v5 = vpop.f32.mrf.mxu1 }
  0xe7   :  { %378 = vst.msk [vmem:[%s784_s3 + $0x48] sm:$0xff] %vm368_vm1, %v277_v2  ;;  %394 = vst.msk [vmem:[%s784_s3 + $0xc8] sm:$0xff] %vm368_vm1, %v341_v3  ;;  %v298_v6 = vadd.f32 %v480_v4, %v619_v19  ;;  %v362_v7 = vadd.f32 %v496_v5, %v619_v19 }
  0xe8   :  { %v289_v8 = vpop.f32.mrf.mxu0  ;;  %v353_v9 = vpop.f32.mrf.mxu1 }
  0xe9   :  { %383 = vst.msk [vmem:[%s784_s3 + $0x70] sm:$0xff] %vm368_vm1, %v298_v6  ;;  %399 = vst.msk [vmem:[%s784_s3 + $0xf0] sm:$0xff] %vm368_vm1, %v362_v7  ;;  %v290_v10 = vadd.f32 %v619_v19, %v289_v8  ;;  %v354_v11 = vadd.f32 %v619_v19, %v353_v9 }
  0xea   :  { %v481_v12 = vpop.f32.mrf.mxu0  ;;  %v497_v13 = vpop.f32.mrf.mxu1 }
  0xeb   :  { %381 = vst.msk [vmem:[%s784_s3 + $0x60] sm:$0xff] %vm368_vm1, %v290_v10  ;;  %397 = vst.msk [vmem:[%s784_s3 + $0xe0] sm:$0xff] %vm368_vm1, %v354_v11  ;;  %v301_v14 = vadd.f32 %v481_v12, %v619_v19  ;;  %v365_v15 = vadd.f32 %v497_v13, %v619_v19 }
  0xec   :  { %v292_v16 = vpop.f32.mrf.mxu0  ;;  %v356_v17 = vpop.f32.mrf.mxu1 }
  0xed   :  { %384 = vst.msk [vmem:[%s784_s3 + $0x78] sm:$0xff] %vm368_vm1, %v301_v14  ;;  %400 = vst.msk [vmem:[%s784_s3 + $0xf8] sm:$0xff] %vm368_vm1, %v365_v15  ;;  %v293_v18 = vadd.f32 %v619_v19, %v292_v16  ;;  %v357_v20 = vadd.f32 %v619_v19, %v356_v17 }
  0xef   :  { %382 = vst.msk [vmem:[%s784_s3 + $0x68] sm:$0xff] %vm368_vm1, %v293_v18  ;;  %398 = vst.msk [vmem:[%s784_s3 + $0xe8] sm:$0xff] %vm368_vm1, %v357_v20 }

</bundles_post_ra>
